<compile_context>
chip_gen: v6e
topology: v6e:2x2x1
jax: 0.10.0
libtpu: 0.0.40
codegen_flags: <defaults>
</compile_context>

<pallas_src>
import functools

import jax
import jax.numpy as jnp
from jax.experimental import pallas as pl
from jax.experimental.pallas import tpu as pltpu

EPS = 1e-5  # PyTorch BatchNorm2d default eps
VMEM_LIMIT = 48 * 1024 * 1024  # <= 56 MiB: safe on v5e/v6e (128 MiB) and v7x (64 MiB)


def _round_up(x, m):
    return ((x + m - 1) // m) * m


def _pad2(x, rp, cp):
    r, c = x.shape
    if rp == r and cp == c:
        return x
    return jnp.pad(x, ((0, rp - r), (0, cp - c)))


def _pad_row(v, np_):
    n = v.shape[0]
    v = v.reshape(1, n)
    if np_ == n:
        return v
    return jnp.pad(v, ((0, 0), (0, np_ - n)))


# ----------------------------------------------------------------------------
# Pallas kernels
# ----------------------------------------------------------------------------
def _fused_matmul_kernel(a_ref, w_ref, scale_ref, shift_ref, o_ref, acc_ref,
                         *, apply_relu):
    """out = act((A @ W) * scale + shift); K-reduction over innermost grid axis."""
    k = pl.program_id(2)

    @pl.when(k == 0)
    def _():
        acc_ref[...] = jnp.zeros_like(acc_ref)

    # bf16 x bf16 -> f32 accumulate: single-pass MXU path.
    acc_ref[...] += jnp.dot(a_ref[...], w_ref[...],
                            preferred_element_type=jnp.float32)

    @pl.when(k == pl.num_programs(2) - 1)
    def _():
        y = acc_ref[...] * scale_ref[...] + shift_ref[...]
        if apply_relu:
            y = jnp.maximum(y, 0.0)
        o_ref[...] = y.astype(o_ref.dtype)


def _fused_matmul_res_kernel(a_ref, w_ref, scale_ref, shift_ref, res_ref,
                             o_ref, acc_ref, *, apply_relu):
    """Same as above but with a residual add in the epilogue."""
    k = pl.program_id(2)

    @pl.when(k == 0)
    def _():
        acc_ref[...] = jnp.zeros_like(acc_ref)

    acc_ref[...] += jnp.dot(a_ref[...], w_ref[...],
                            preferred_element_type=jnp.float32)

    @pl.when(k == pl.num_programs(2) - 1)
    def _():
        y = acc_ref[...] * scale_ref[...] + shift_ref[...] + res_ref[...]
        if apply_relu:
            y = jnp.maximum(y, 0.0)
        o_ref[...] = y.astype(o_ref.dtype)


def fused_matmul(a, w, scale, shift, residual=None, relu=False):
    """Pallas fused GEMM (bf16 MXU) + per-column scale/shift + residual + ReLU."""
    M, K = a.shape
    _, N = w.shape

    tk = min(512, _round_up(K, 128))
    tn = min(256, _round_up(N, 128))
    tm = min(512, _round_up(M, 16))   # 16-aligned for bf16 sublane packing
    Mp = _round_up(M, tm)
    Kp = _round_up(K, tk)
    Np = _round_up(N, tn)

    a_p = _pad2(a.astype(jnp.bfloat16), Mp, Kp)
    w_p = _pad2(w.astype(jnp.bfloat16), Kp, Np)
    sc_p = _pad_row(scale.astype(jnp.float32), Np)
    sh_p = _pad_row(shift.astype(jnp.float32), Np)

    grid = (Mp // tm, Np // tn, Kp // tk)

    base_specs = [
        pl.BlockSpec((tm, tk), lambda m, n, k: (m, k)),   # A
        pl.BlockSpec((tk, tn), lambda m, n, k: (k, n)),   # W
        pl.BlockSpec((1, tn), lambda m, n, k: (0, n)),    # scale
        pl.BlockSpec((1, tn), lambda m, n, k: (0, n)),    # shift
    ]

    if residual is None:
        kernel = functools.partial(_fused_matmul_kernel, apply_relu=relu)
        in_specs = base_specs
        operands = (a_p, w_p, sc_p, sh_p)
    else:
        res_p = _pad2(residual.astype(jnp.float32), Mp, Np)
        kernel = functools.partial(_fused_matmul_res_kernel, apply_relu=relu)
        in_specs = base_specs + [pl.BlockSpec((tm, tn), lambda m, n, k: (m, n))]
        operands = (a_p, w_p, sc_p, sh_p, res_p)

    out = pl.pallas_call(
        kernel,
        out_shape=jax.ShapeDtypeStruct((Mp, Np), jnp.float32),
        grid_spec=pltpu.PrefetchScalarGridSpec(
            num_scalar_prefetch=0,
            grid=grid,
            in_specs=in_specs,
            out_specs=pl.BlockSpec((tm, tn), lambda m, n, k: (m, n)),
            scratch_shapes=[pltpu.VMEM((tm, tn), jnp.float32)],
        ),
        compiler_params=pltpu.CompilerParams(
            dimension_semantics=("parallel", "parallel", "arbitrary"),
            vmem_limit_bytes=VMEM_LIMIT,
        ),
    )(*operands)
    return out[:M, :N]


def _maxpool_kernel(p_ref, o_ref):
    # p_ref: [taps, tr, 128] -> elementwise max over the window taps.
    o_ref[...] = jnp.max(p_ref[...], axis=0)


def maxpool2d_ceil(x, kernel=3, stride=2, padding=1):
    """MaxPool2d(kernel, stride, padding, ceil_mode=True) on NHWC input."""
    N, H, W, C = x.shape
    Ho = -(-(H + 2 * padding - kernel) // stride) + 1
    Wo = -(-(W + 2 * padding - kernel) // stride) + 1
    # PyTorch ceil_mode rule: last window must start inside the padded input.
    if (Ho - 1) * stride >= H + padding:
        Ho -= 1
    if (Wo - 1) * stride >= W + padding:
        Wo -= 1
    pad_h = (Ho - 1) * stride + kernel - H - padding
    pad_w = (Wo - 1) * stride + kernel - W - padding
    neg = jnp.finfo(x.dtype).min
    xp = jnp.pad(x, ((0, 0), (padding, pad_h), (padding, pad_w), (0, 0)),
                 constant_values=neg)
    wins = []
    for i in range(kernel):
        for j in range(kernel):
            wins.append(xp[:, i:i + (Ho - 1) * stride + 1:stride,
                           j:j + (Wo - 1) * stride + 1:stride, :])
    taps = kernel * kernel
    M = N * Ho * Wo
    total = M * C

    # Lane-dense layout: flatten (M, C) -> rows of 128 lanes, tile over rows.
    LANE = 128
    r_needed = -(-total // LANE)
    tr = min(256, _round_up(r_needed, 8))
    R = _round_up(r_needed, tr)
    flat = jnp.stack(wins, axis=0).reshape(taps, total)
    if R * LANE != total:
        flat = jnp.pad(flat, ((0, 0), (0, R * LANE - total)),
                       constant_values=neg)
    patches = flat.reshape(taps, R, LANE)

    out = pl.pallas_call(
        _maxpool_kernel,
        out_shape=jax.ShapeDtypeStruct((R, LANE), x.dtype),
        grid=(R // tr,),
        in_specs=[pl.BlockSpec((taps, tr, LANE), lambda i: (0, i, 0))],
        out_specs=pl.BlockSpec((tr, LANE), lambda i: (i, 0)),
        compiler_params=pltpu.CompilerParams(
            dimension_semantics=("parallel",),
            vmem_limit_bytes=VMEM_LIMIT,
        ),
    )(patches)
    return out.reshape(-1)[:total].reshape(N, Ho, Wo, C)


# ----------------------------------------------------------------------------
# Conv glue (im2col in bf16) + fused conv/bn/relu/residual
# ----------------------------------------------------------------------------
def _im2col(x, kh, kw, stride, padding, dilation):
    # Store patches in bf16: halves the materialized im2col buffer and matches
    # the MXU input dtype used by the fused GEMM kernel.
    x = x.astype(jnp.bfloat16)
    N, H, W, C = x.shape
    Ho = (H + 2 * padding - dilation * (kh - 1) - 1) // stride + 1
    Wo = (W + 2 * padding - dilation * (kw - 1) - 1) // stride + 1
    if kh == 1 and kw == 1 and padding == 0:
        xs = x[:, ::stride, ::stride, :]
        return xs.reshape(N * Ho * Wo, C), (N, Ho, Wo)
    # TODO(synk): accumulate over kh*kw taps inside the GEMM kernel (extra
    # grid axis over shifted windows) to avoid materializing the KxK blow-up.
    xp = jnp.pad(x, ((0, 0), (padding, padding), (padding, padding), (0, 0)))
    cols = []
    for i in range(kh):
        for j in range(kw):
            h0, w0 = i * dilation, j * dilation
            cols.append(xp[:, h0:h0 + (Ho - 1) * stride + 1:stride,
                           w0:w0 + (Wo - 1) * stride + 1:stride, :])
    patches = jnp.stack(cols, axis=3)  # [N, Ho, Wo, kh*kw, C]
    return patches.reshape(N * Ho * Wo, kh * kw * C), (N, Ho, Wo)


def conv2d_bn(x, w, bias, bn, stride=1, padding=0, dilation=1,
              relu=False, residual=None):
    """Conv2d + (frozen eval-mode) BatchNorm + optional residual + ReLU."""
    Cout, Cin, kh, kw = w.shape
    a, (N, Ho, Wo) = _im2col(x, kh, kw, stride, padding, dilation)
    wm = jnp.transpose(w, (2, 3, 1, 0)).reshape(kh * kw * Cin, Cout)
    gamma, beta, rmean, rvar = bn
    scale = gamma / jnp.sqrt(rvar + EPS)
    shift = (bias - rmean) * scale + beta
    res = None if residual is None else residual.reshape(N * Ho * Wo, Cout)
    y = fused_matmul(a, wm, scale, shift, residual=res, relu=relu)
    return y.reshape(N, Ho, Wo, Cout)


# ----------------------------------------------------------------------------
# Parameters (deterministic, matching the module's __init__ shapes)
# ----------------------------------------------------------------------------
def _conv_w(key, cout, cin, kh, kw):
    return 0.01 * jax.random.normal(key, (cout, cin, kh, kw), jnp.float32)


def _bn(c):
    # BN with affine_par=True, frozen: weight=1, bias=0, running stats (0, 1).
    return (jnp.ones((c,), jnp.float32), jnp.zeros((c,), jnp.float32),
            jnp.zeros((c,), jnp.float32), jnp.ones((c,), jnp.float32))


def make_resnet_params(key, input_channels, layers):
    keys = iter(jax.random.split(key, 512))
    params = {
        'conv1_w': _conv_w(next(keys), 64, input_channels, 7, 7),
        'conv1_b': 0.01 * jax.random.normal(next(keys), (64,), jnp.float32),
        'bn1': _bn(64),
    }
    inplanes = 64
    plan = [(64, layers[0], 1, 1), (128, layers[1], 2, 1),
            (256, layers[2], 1, 2), (512, layers[3], 1, 4)]
    all_layers = []
    for planes, nblocks, stride, dilation in plan:
        blocks = []
        for bi in range(nblocks):
            s = stride if bi == 0 else 1
            has_ds = (bi == 0) and (stride != 1 or inplanes != planes * 4
                                    or dilation in (2, 4))
            blk = {
                'conv1_w': _conv_w(next(keys), planes, inplanes, 1, 1),
                'bn1': _bn(planes),
                'conv2_w': _conv_w(next(keys), planes, planes, 3, 3),
                'bn2': _bn(planes),
                'conv3_w': _conv_w(next(keys), planes * 4, planes, 1, 1),
                'bn3': _bn(planes * 4),
                'stride': s,
                'dilation': dilation,
            }
            if has_ds:
                blk['ds_w'] = _conv_w(next(keys), planes * 4, inplanes, 1, 1)
                blk['ds_bn'] = _bn(planes * 4)
            blocks.append(blk)
            inplanes = planes * 4
        all_layers.append(blocks)
    params['layers'] = all_layers
    return params


# ----------------------------------------------------------------------------
# Forward pass
# ----------------------------------------------------------------------------
def bottleneck_forward(x, blk):
    s, d = blk['stride'], blk['dilation']
    pad = 1 if d == 1 else d
    zb = lambda c: jnp.zeros((c,), jnp.float32)

    out = conv2d_bn(x, blk['conv1_w'], zb(blk['conv1_w'].shape[0]),
                    blk['bn1'], stride=s, relu=True)
    out = conv2d_bn(out, blk['conv2_w'], zb(blk['conv2_w'].shape[0]),
                    blk['bn2'], stride=1, padding=pad, dilation=d, relu=True)
    if 'ds_w' in blk:
        identity = conv2d_bn(x, blk['ds_w'], zb(blk['ds_w'].shape[0]),
                             blk['ds_bn'], stride=s, relu=False)
    else:
        identity = x
    out = conv2d_bn(out, blk['conv3_w'], zb(blk['conv3_w'].shape[0]),
                    blk['bn3'], relu=True, residual=identity)
    return out


def resnet_forward(params, x_nchw):
    x = jnp.transpose(x_nchw, (0, 2, 3, 1))  # NCHW -> NHWC
    x = conv2d_bn(x, params['conv1_w'], params['conv1_b'], params['bn1'],
                  stride=2, padding=3, relu=True)
    x = maxpool2d_ceil(x, kernel=3, stride=2, padding=1)
    for blocks in params['layers']:
        for blk in blocks:
            x = bottleneck_forward(x, blk)
    # TODO(synk): layer5 / self.isRefine head is not defined when
    # Layer5_Module=None in the reference __init__, so return layer4 features.
    return jnp.transpose(x, (0, 3, 1, 2))  # NHWC -> NCHW


if __name__ == "__main__":
    key = jax.random.PRNGKey(0)
    pkey, xkey = jax.random.split(key)
    layers = [1, 1, 1, 1]          # tiny Bottleneck ResNet for the demo
    input_channels = 4
    params = make_resnet_params(pkey, input_channels, layers)
    x = jax.random.normal(xkey, (2, input_channels, 16, 16), jnp.float32)
    out = resnet_forward(params, x)
    jax.block_until_ready(out)
    assert out.shape == (2, 2048, 3, 3), out.shape
    print("KERNEL_OK")
</pallas_src>

<mosaic_0001>
module attributes {stable_mosaic.version = 11 : i64} {
  func.func @_fused_matmul_kernel(%arg0: i32, %arg1: i32, %arg2: i32, %arg3: memref<128x256xbf16, #tpu.memory_space<vmem>>, %arg4: memref<256x128xbf16, #tpu.memory_space<vmem>>, %arg5: memref<1x128xf32, #tpu.memory_space<vmem>>, %arg6: memref<1x128xf32, #tpu.memory_space<vmem>>, %arg7: memref<128x128xf32, #tpu.memory_space<vmem>>, %arg8: memref<128x128xf32, #tpu.memory_space<vmem>>) attributes {dimension_semantics = [#tpu.dimension_semantics<parallel>, #tpu.dimension_semantics<parallel>, #tpu.dimension_semantics<arbitrary>], iteration_bounds = array<i64: 1, 1, 1>, scalar_prefetch = 0 : i64, scratch_operands = 1 : i64, tpu.core_type = #tpu.core_type<tc>, window_params = [{transform_indices = @transform_0, window_bounds = array<i64: 128, 256>}, {transform_indices = @transform_1, window_bounds = array<i64: 256, 128>}, {transform_indices = @transform_2, window_bounds = array<i64: 1, 128>}, {transform_indices = @transform_3, window_bounds = array<i64: 1, 128>}, {transform_indices = @transform_4, window_bounds = array<i64: 128, 128>}]} {
    %c0_i32 = arith.constant 0 : i32
    %0 = arith.cmpi eq, %arg2, %c0_i32 : i32
    %1 = arith.extui %0 : i1 to i32
    %c0_i32_0 = arith.constant 0 : i32
    %2 = arith.cmpi ne, %1, %c0_i32_0 : i32
    scf.if %2 {
      %cst_10 = arith.constant 0.000000e+00 : f32
      %12 = vector.broadcast %cst_10 : f32 to vector<128x128xf32>
      %c0_11 = arith.constant 0 : index
      %c0_12 = arith.constant 0 : index
      %13 = vector.load %arg8[%c0_11, %c0_12] : memref<128x128xf32, #tpu.memory_space<vmem>>, vector<128x128xf32>
      tpu.vector_store %arg8[%c0_11, %c0_12], %12 {strides = array<i32>} : memref<128x128xf32, #tpu.memory_space<vmem>>, vector<128x128xf32>,
    } else {
    }
    %c0 = arith.constant 0 : index
    %c0_1 = arith.constant 0 : index
    %3 = vector.load %arg8[%c0, %c0_1] : memref<128x128xf32, #tpu.memory_space<vmem>>, vector<128x128xf32>
    %c0_2 = arith.constant 0 : index
    %c0_3 = arith.constant 0 : index
    %4 = vector.load %arg3[%c0_2, %c0_3] : memref<128x256xbf16, #tpu.memory_space<vmem>>, vector<128x256xbf16>
    %c0_4 = arith.constant 0 : index
    %c0_5 = arith.constant 0 : index
    %5 = vector.load %arg4[%c0_4, %c0_5] : memref<256x128xbf16, #tpu.memory_space<vmem>>, vector<256x128xbf16>
    %cst = arith.constant dense<0.000000e+00> : vector<128x128xf32>
    %6 = tpu.matmul %4, %5, %cst {dimension_numbers = #tpu.dot_dimension_numbers<[1], [0], [0], [1], [0, 0, 1, 1], [], []>} : vector<128x256xbf16>, vector<256x128xbf16>, vector<128x128xf32> -> vector<128x128xf32>
    %7 = arith.addf %3, %6 : vector<128x128xf32>
    %c0_6 = arith.constant 0 : index
    %c0_7 = arith.constant 0 : index
    %8 = vector.load %arg8[%c0_6, %c0_7] : memref<128x128xf32, #tpu.memory_space<vmem>>, vector<128x128xf32>
    tpu.vector_store %arg8[%c0_6, %c0_7], %7 {strides = array<i32>} : memref<128x128xf32, #tpu.memory_space<vmem>>, vector<128x128xf32>,
    %c0_i32_8 = arith.constant 0 : i32
    %9 = arith.cmpi eq, %arg2, %c0_i32_8 : i32
    %10 = arith.extui %9 : i1 to i32
    %c0_i32_9 = arith.constant 0 : i32
    %11 = arith.cmpi ne, %10, %c0_i32_9 : i32
    scf.if %11 {
      %c0_10 = arith.constant 0 : index
      %c0_11 = arith.constant 0 : index
      %12 = vector.load %arg8[%c0_10, %c0_11] : memref<128x128xf32, #tpu.memory_space<vmem>>, vector<128x128xf32>
      %c0_12 = arith.constant 0 : index
      %c0_13 = arith.constant 0 : index
      %13 = vector.load %arg5[%c0_12, %c0_13] : memref<1x128xf32, #tpu.memory_space<vmem>>, vector<1x128xf32>
      %14 = vector.broadcast %13 : vector<1x128xf32> to vector<128x128xf32>
      %15 = arith.mulf %12, %14 : vector<128x128xf32>
      %c0_14 = arith.constant 0 : index
      %c0_15 = arith.constant 0 : index
      %16 = vector.load %arg6[%c0_14, %c0_15] : memref<1x128xf32, #tpu.memory_space<vmem>>, vector<1x128xf32>
      %17 = vector.broadcast %16 : vector<1x128xf32> to vector<128x128xf32>
      %18 = arith.addf %15, %17 : vector<128x128xf32>
      %cst_16 = arith.constant 0.000000e+00 : f32
      %19 = vector.broadcast %cst_16 : f32 to vector<128x128xf32>
      %20 = arith.maximumf %18, %19 : vector<128x128xf32>
      %c0_17 = arith.constant 0 : index
      %c0_18 = arith.constant 0 : index
      %21 = vector.load %arg7[%c0_17, %c0_18] : memref<128x128xf32, #tpu.memory_space<vmem>>, vector<128x128xf32>
      tpu.vector_store %arg7[%c0_17, %c0_18], %20 {strides = array<i32>} : memref<128x128xf32, #tpu.memory_space<vmem>>, vector<128x128xf32>,
    } else {
    }
    return
  }
  func.func @transform_0(%arg0: i32, %arg1: i32, %arg2: i32) -> (i32, i32) {
    %c0_i32 = arith.constant 0 : i32
    return %arg0, %arg2 : i32, i32
  }
  func.func @transform_1(%arg0: i32, %arg1: i32, %arg2: i32) -> (i32, i32) {
    %c0_i32 = arith.constant 0 : i32
    return %arg2, %arg1 : i32, i32
  }
  func.func @transform_2(%arg0: i32, %arg1: i32, %arg2: i32) -> (i32, i32) {
    %c0_i32 = arith.constant 0 : i32
    %c0_i32_0 = arith.constant 0 : i32
    return %c0_i32, %arg1 : i32, i32
  }
  func.func @transform_3(%arg0: i32, %arg1: i32, %arg2: i32) -> (i32, i32) {
    %c0_i32 = arith.constant 0 : i32
    %c0_i32_0 = arith.constant 0 : i32
    return %c0_i32, %arg1 : i32, i32
  }
  func.func @transform_4(%arg0: i32, %arg1: i32, %arg2: i32) -> (i32, i32) {
    %c0_i32 = arith.constant 0 : i32
    return %arg0, %arg1 : i32, i32
  }
}

</mosaic_0001>

<bundles_post_ra>
// kernel: tpu_custom_call.1
= control target key start
LH: loop header
LB: loop body
LE: loop exit
PB: predicated region body
PF: predicated region fallthrough
CT: control target
= control target key end

     0   :  { %9 = vsyncpa [#allocation4], 0  ;;  %s867_s0 = inlined_call_operand.hbm [shape: bf16[128,256], index: 0, kind: input, shape index: {}]   ;;  %s868_s1 = inlined_call_operand.hbm [shape: bf16[256,128], index: 1, kind: input, shape index: {}]   ;;  %s869_s2 = inlined_call_operand.vmem [shape: f32[1,128], index: 2, kind: input, shape index: {}]   ;;  %s870_s3 = inlined_call_operand.vmem [shape: f32[1,128], index: 3, kind: input, shape index: {}]   ;;  %s871_s4 = inlined_call_operand.hbm [shape: f32[128,128], index: 4, kind: output, shape index: {}]  }
   0x1   :  { %10 = vsyncpa [#allocation7], 0 }
   0x2   :  { %11 = vsyncpa [#allocation5], 0  ;;  %s778_s15 = smov [#allocation3]  }
   0x3   :  { %s17_s16 = sshll.u32 %s778_s15, 4  ;;  %s18_s16 = int_to_ptr.vmem [resolvable:$true] %s17_s16 }
   0x4   :  { %s720_s17 = scalar_lea.vmem %s18_s16, 2048  ;;  %p725_p1 = scmp.lt.s32.totalorder %s18_s16, %s18_s16 }
   0x5   :  { %p721_p0 = scmp.ne.s32.totalorder %s18_s16, %s720_s17  ;;  %p726_p2 = scmp.lt.s32.totalorder %s720_s17, %s720_s17 }
   0x7   :  { %p727_p3 = por %p726_p2, %p725_p1 }
   0x9   :  { %p728_p4 = pnand %p727_p3, %p721_p0 }
   0xb   :  { %731 = shalt.err (!%p728_p4)
}
   0xc   :  { %s779_s18 = smov 128   ;;  %s780_s19 = smov 8  }
   0xd   :  { %23 = dma.hbm_to_vmem [thread:$0]  %s867_s0, 2048, %s18_s16, [#allocation4], %s779_s18, %s779_s18, %s780_s19  }
   0xe   :  { %s781_s22 = smov [#allocation6]  }
   0xf   :  { %s29_s23 = sshll.u32 %s781_s22, 4  ;;  %s30_s23 = int_to_ptr.vmem [resolvable:$true] %s29_s23 }
  0x10   :  { %s740_s24 = scalar_lea.vmem %s30_s23, 2048  ;;  %p745_p6 = scmp.lt.s32.totalorder %s30_s23, %s30_s23 }
  0x11   :  { %p741_p5 = scmp.ne.s32.totalorder %s30_s23, %s740_s24  ;;  %p746_p7 = scmp.lt.s32.totalorder %s740_s24, %s740_s24 }
  0x13   :  { %p747_p8 = por %p746_p7, %p745_p6 }
  0x15   :  { %p748_p9 = pnand %p747_p8, %p741_p5 }
  0x17   :  { %751 = shalt.err (!%p748_p9)
}
  0x18   :  { %s782_s25 = smov 64   ;;  %s783_s26 = smov 4  }
  0x19   :  { %35 = dma.hbm_to_vmem [thread:$0]  %s868_s1, 2048, %s30_s23, [#allocation7], %s782_s25, %s782_s25, %s783_s26  }
  0x1a   :  { %772 = dma.done.wait [#allocation4], 2048  }
  0x1b   :  { %773 = vsyncadd [#allocation4], 4294965248 }
  0x1c   :  { %774 = dma.done.wait [#allocation7], 2048  }
  0x1d   :  { %775 = vsyncadd [#allocation7], 4294965248  ;;  %v672_v0 = vld [vmem:[#allocation6 + $0x78] sm:$0xff]   ;;  %v674_v2 = vld [vmem:[#allocation6 + $0x70] sm:$0xff]  }
  0x1e   :  { %v673_v1 = vld [vmem:[#allocation6 + $0x38] sm:$0xff]   ;;  %585 = vmatprep.subr.bf16.mxu0 %v672_v0  ;;  %649 = vmatprep.subr.bf16.mxu1 %v672_v0  ;;  %v675_v3 = vld [vmem:[#allocation6 + $0x30] sm:$0xff]   ;;  %v676_v4 = vld [vmem:[#allocation6 + $0x68] sm:$0xff]  }
  0x1f   :  { %586 = vmatpush3.bf16.msra.mxu0 %v673_v1  ;;  %657 = vmatpush3.bf16.msra.mxu1 %v673_v1  ;;  %v677_v5 = vld [vmem:[#allocation6 + $0x28] sm:$0xff]   ;;  %v678_v6 = vld [vmem:[#allocation6 + $0x60] sm:$0xff]   ;;  %v680_v8 = vld [vmem:[#allocation6 + $0x58] sm:$0xff]  }
  0x20   :  { %587 = vmatprep.subr.bf16.mxu0 %v674_v2  ;;  %650 = vmatprep.subr.bf16.mxu1 %v674_v2  ;;  %v679_v7 = vld [vmem:[#allocation6 + $0x20] sm:$0xff]   ;;  %v681_v9 = vld [vmem:[#allocation6 + $0x18] sm:$0xff]   ;;  %v682_v10 = vld [vmem:[#allocation6 + $0x50] sm:$0xff]  }
  0x21   :  { %v690_v11 = vld [vmem:[#allocation3 + $0x4] ss:$8 sps:$4 sm:$0xff]   ;;  %v683_v13 = vld [vmem:[#allocation6 + $0x10] sm:$0xff]   ;;  %v688_v18 = vld [vmem:[#allocation3] ss:$8 sps:$4 sm:$0xff]  }
  0x22   :  { %v693_v12 = vld [vmem:[#allocation3 + $0x44] ss:$8 sps:$4 sm:$0xff]   ;;  %339 = vmatprep.mubr.bf16.mxu0 %v690_v11  ;;  %v691_v19 = vld [vmem:[#allocation3 + $0x40] ss:$8 sps:$4 sm:$0xff]   ;;  %v694_v20 = vld [vmem:[#allocation3 + $0x14] ss:$8 sps:$4 sm:$0xff]  }
  0x23   :  { %588 = vmatpush3.bf16.msra.mxu0 %v675_v3  ;;  %658 = vmatpush3.bf16.msra.mxu1 %v675_v3  ;;  %v684_v14 = vld [vmem:[#allocation6 + $0x48] sm:$0xff]   ;;  %v686_v16 = vld [vmem:[#allocation6 + $0x40] sm:$0xff]   ;;  %v696_v21 = vld [vmem:[#allocation3 + $0x54] ss:$8 sps:$4 sm:$0xff]  }
  0x24   :  { %589 = vmatprep.subr.bf16.mxu0 %v676_v4  ;;  %651 = vmatprep.subr.bf16.mxu1 %v676_v4  ;;  %v685_v15 = vld [vmem:[#allocation6 + $0x8] sm:$0xff]   ;;  %v687_v17 = vld [vmem:[#allocation6] sm:$0xff]   ;;  %v698_v22 = vld [vmem:[#allocation3 + $0x10] ss:$8 sps:$4 sm:$0xff]  }
  0x25   :  { %371 = vmatprep.mubr.bf16.mxu1 %v693_v12  ;;  %v699_v23 = vld [vmem:[#allocation3 + $0x50] ss:$8 sps:$4 sm:$0xff]   ;;  %v700_v24 = vld [vmem:[#allocation3 + $0x24] ss:$8 sps:$4 sm:$0xff]   ;;  %v704_v26 = vld [vmem:[#allocation3 + $0x20] ss:$8 sps:$4 sm:$0xff]  }
  0x26   :  { %v702_v25 = vld [vmem:[#allocation3 + $0x64] ss:$8 sps:$4 sm:$0xff]   ;;  %v705_v27 = vld [vmem:[#allocation3 + $0x60] ss:$8 sps:$4 sm:$0xff]   ;;  %v706_v28 = vld [vmem:[#allocation3 + $0x34] ss:$8 sps:$4 sm:$0xff]  }
  0x27   :  { %590 = vmatpush3.bf16.msra.mxu0 %v677_v5  ;;  %659 = vmatpush3.bf16.msra.mxu1 %v677_v5  ;;  %v708_v29 = vld [vmem:[#allocation3 + $0x74] ss:$8 sps:$4 sm:$0xff]   ;;  %v710_v30 = vld [vmem:[#allocation3 + $0x30] ss:$8 sps:$4 sm:$0xff]   ;;  %v822_v35 = vld [vmem:[%s869_s2] ss:$0 sm:$0xff] }
  0x28   :  { %591 = vmatprep.subr.bf16.mxu0 %v678_v6  ;;  %652 = vmatprep.subr.bf16.mxu1 %v678_v6  ;;  %v711_v31 = vld [vmem:[#allocation3 + $0x70] ss:$8 sps:$4 sm:$0xff]   ;;  %v827_v39 = vld [vmem:[%s870_s3] ss:$0 sm:$0xff]  ;;  %s784_s2 = smov [#allocation8]  }
  0x29   :  { %s538_s3 = sshll.u32 %s784_s2, 4  ;;  %s539_s3 = int_to_ptr.vmem [resolvable:$true] %s538_s3 }
  0x2a   :  { %s752_s5 = scalar_lea.vmem %s539_s3, 2048  ;;  %p757_p11 = scmp.lt.s32.totalorder %s539_s3, %s539_s3 }
  0x2b   :  { %592 = vmatpush3.bf16.msra.mxu0 %v679_v7  ;;  %660 = vmatpush3.bf16.msra.mxu1 %v679_v7  ;;  %p753_p10 = scmp.ne.s32.totalorder %s539_s3, %s752_s5  ;;  %p758_p12 = scmp.lt.s32.totalorder %s752_s5, %s752_s5 }
  0x2c   :  { %593 = vmatprep.subr.bf16.mxu0 %v680_v8  ;;  %653 = vmatprep.subr.bf16.mxu1 %v680_v8 }
  0x2d   :  { %p759_p13 = por %p758_p12, %p757_p11 }
  0x2f   :  { %594 = vmatpush3.bf16.msra.mxu0 %v681_v9  ;;  %661 = vmatpush3.bf16.msra.mxu1 %v681_v9  ;;  %p760_p0 = pnand %p759_p13, %p753_p10 }
  0x30   :  { %595 = vmatprep.subr.bf16.mxu0 %v682_v10  ;;  %654 = vmatprep.subr.bf16.mxu1 %v682_v10 }
  0x33   :  { %596 = vmatpush3.bf16.msra.mxu0 %v683_v13  ;;  %662 = vmatpush3.bf16.msra.mxu1 %v683_v13 }
  0x34   :  { %597 = vmatprep.subr.bf16.mxu0 %v684_v14  ;;  %655 = vmatprep.subr.bf16.mxu1 %v684_v14 }
  0x37   :  { %598 = vmatpush3.bf16.msra.mxu0 %v685_v15  ;;  %663 = vmatpush3.bf16.msra.mxu1 %v685_v15 }
  0x38   :  { %599 = vmatprep.subr.bf16.mxu0 %v686_v16  ;;  %656 = vmatprep.subr.bf16.mxu1 %v686_v16 }
  0x3b   :  { %600 = vmatpush3.bf16.msra.mxu0 %v687_v17  ;;  %664 = vmatpush3.bf16.msra.mxu1 %v687_v17 }
  0x3e   :  { %340 = vmatmul.mubr.bf16.vlgmr.msra.gmra.mxu0 %v688_v18  ;;  %372 = vmatmul.mubr.bf16.vlgmr.msra.gmra.mxu1 %v691_v19 }
  0x3f   :  { %347 = vmatprep.mubr.bf16.mxu0 %v694_v20  ;;  %379 = vmatprep.mubr.bf16.mxu1 %v696_v21 }
  0x46   :  { %348 = vmatmul.mubr.bf16.gmra.mxu0 %v698_v22  ;;  %380 = vmatmul.mubr.bf16.gmra.mxu1 %v699_v23 }
  0x47   :  { %355 = vmatprep.mubr.bf16.mxu0 %v700_v24  ;;  %387 = vmatprep.mubr.bf16.mxu1 %v702_v25 }
  0x4e   :  { %356 = vmatmul.mubr.bf16.gmra.mxu0 %v704_v26  ;;  %388 = vmatmul.mubr.bf16.gmra.mxu1 %v705_v27 }
  0x4f   :  { %363 = vmatprep.mubr.bf16.mxu0 %v706_v28  ;;  %395 = vmatprep.mubr.bf16.mxu1 %v708_v29 }
  0x56   :  { %364 = vmatmul.mubr.bf16.gmra.mxu0 %v710_v30  ;;  %396 = vmatmul.mubr.bf16.gmra.mxu1 %v711_v31 }
  0xfe   :  { %v601_v32 = vpop.f32.mrf.mxu0  ;;  %v625_v33 = vpop.f32.mrf.mxu1 }
 0x100   :  { %v602_v34 = vpop.f32.mrf.mxu0  ;;  %v626_v36 = vpop.f32.mrf.mxu1 }
 0x101   :  { %v603_v37 = vadd.f32 %v602_v34, %v601_v32  ;;  %v627_v38 = vadd.f32 %v626_v36, %v625_v33 }
 0x102   :  { %v604_v40 = vpop.f32.mrf.mxu0  ;;  %v628_v41 = vpop.f32.mrf.mxu1 }
 0x103   :  { %v462_v42 = vmul.f32 %v603_v37, %v822_v35  ;;  %v470_v43 = vmul.f32 %v627_v38, %v822_v35 }
 0x104   :  { %v605_v44 = vpop.f32.mrf.mxu0  ;;  %v629_v45 = vpop.f32.mrf.mxu1 }
 0x105   :  { %v485_v46 = vadd.f32 %v827_v39, %v462_v42  ;;  %v493_v47 = vadd.f32 %v827_v39, %v470_v43  ;;  %v606_v48 = vadd.f32 %v605_v44, %v604_v40  ;;  %v630_v49 = vadd.f32 %v629_v45, %v628_v41 }
 0x106   :  { %v607_v50 = vpop.f32.mrf.mxu0  ;;  %v631_v51 = vpop.f32.mrf.mxu1 }
 0x107   :  { %v501_v52 = vmax.f32 %v485_v46, 0.0  ;;  %v509_v53 = vmax.f32 %v493_v47, 0.0  ;;  %v463_v54 = vmul.f32 %v606_v48, %v822_v35  ;;  %v471_v55 = vmul.f32 %v630_v49, %v822_v35 }
 0x108   :  { %v608_v56 = vpop.f32.mrf.mxu0  ;;  %v632_v57 = vpop.f32.mrf.mxu1 }
 0x109   :  { %517 = vst [vmem:[#allocation8] sm:$0xff] %v501_v52  ;;  %525 = vst [vmem:[#allocation8 + $0x40] sm:$0xff] %v509_v53  ;;  %v486_v58 = vadd.f32 %v827_v39, %v463_v54  ;;  %v494_v59 = vadd.f32 %v827_v39, %v471_v55  ;;  %v609_v60 = vadd.f32 %v608_v56, %v607_v50 }
 0x10a   :  { %v633_v61 = vadd.f32 %v632_v57, %v631_v51  ;;  %v610_v62 = vpop.f32.mrf.mxu0  ;;  %v634_v63 = vpop.f32.mrf.mxu1 }
 0x10b   :  { %v502_v0 = vmax.f32 %v486_v58, 0.0  ;;  %v510_v1 = vmax.f32 %v494_v59, 0.0  ;;  %v464_v2 = vmul.f32 %v609_v60, %v822_v35 }
 0x10c   :  { %v472_v3 = vmul.f32 %v633_v61, %v822_v35  ;;  %v611_v4 = vpop.f32.mrf.mxu0  ;;  %v635_v5 = vpop.f32.mrf.mxu1 }
 0x10d   :  { %518 = vst [vmem:[#allocation8 + $0x8] sm:$0xff] %v502_v0  ;;  %526 = vst [vmem:[#allocation8 + $0x48] sm:$0xff] %v510_v1  ;;  %v487_v6 = vadd.f32 %v827_v39, %v464_v2  ;;  %v612_v8 = vadd.f32 %v611_v4, %v610_v62  ;;  %v636_v9 = vadd.f32 %v635_v5, %v634_v63 }
 0x10e   :  { %v495_v7 = vadd.f32 %v827_v39, %v472_v3  ;;  %v613_v10 = vpop.f32.mrf.mxu0  ;;  %v637_v11 = vpop.f32.mrf.mxu1 }
 0x10f   :  { %v503_v12 = vmax.f32 %v487_v6, 0.0  ;;  %v465_v14 = vmul.f32 %v612_v8, %v822_v35  ;;  %v473_v15 = vmul.f32 %v636_v9, %v822_v35 }
 0x110   :  { %v511_v13 = vmax.f32 %v495_v7, 0.0  ;;  %v614_v16 = vpop.f32.mrf.mxu0  ;;  %v638_v17 = vpop.f32.mrf.mxu1 }
 0x111   :  { %519 = vst [vmem:[#allocation8 + $0x10] sm:$0xff] %v503_v12  ;;  %v488_v18 = vadd.f32 %v827_v39, %v465_v14  ;;  %v496_v19 = vadd.f32 %v827_v39, %v473_v15  ;;  %v615_v20 = vadd.f32 %v614_v16, %v613_v10  ;;  %v639_v21 = vadd.f32 %v638_v17, %v637_v11 }
 0x112   :  { %527 = vst [vmem:[#allocation8 + $0x50] sm:$0xff] %v511_v13  ;;  %v616_v22 = vpop.f32.mrf.mxu0  ;;  %v640_v23 = vpop.f32.mrf.mxu1 }
 0x113   :  { %v504_v24 = vmax.f32 %v488_v18, 0.0  ;;  %v512_v25 = vmax.f32 %v496_v19, 0.0  ;;  %v466_v26 = vmul.f32 %v615_v20, %v822_v35  ;;  %v474_v27 = vmul.f32 %v639_v21, %v822_v35 }
 0x114   :  { %v617_v28 = vpop.f32.mrf.mxu0  ;;  %v641_v29 = vpop.f32.mrf.mxu1 }
 0x115   :  { %520 = vst [vmem:[#allocation8 + $0x18] sm:$0xff] %v504_v24  ;;  %528 = vst [vmem:[#allocation8 + $0x58] sm:$0xff] %v512_v25  ;;  %v489_v30 = vadd.f32 %v827_v39, %v466_v26  ;;  %v497_v31 = vadd.f32 %v827_v39, %v474_v27  ;;  %v618_v32 = vadd.f32 %v617_v28, %v616_v22 }
 0x116   :  { %v642_v33 = vadd.f32 %v641_v29, %v640_v23  ;;  %v619_v34 = vpop.f32.mrf.mxu0  ;;  %v643_v36 = vpop.f32.mrf.mxu1 }
 0x117   :  { %v505_v37 = vmax.f32 %v489_v30, 0.0  ;;  %v513_v38 = vmax.f32 %v497_v31, 0.0  ;;  %v467_v40 = vmul.f32 %v618_v32, %v822_v35 }
 0x118   :  { %v475_v41 = vmul.f32 %v642_v33, %v822_v35  ;;  %v620_v42 = vpop.f32.mrf.mxu0  ;;  %v644_v43 = vpop.f32.mrf.mxu1 }
 0x119   :  { %521 = vst [vmem:[#allocation8 + $0x20] sm:$0xff] %v505_v37  ;;  %529 = vst [vmem:[#allocation8 + $0x60] sm:$0xff] %v513_v38  ;;  %v490_v44 = vadd.f32 %v827_v39, %v467_v40  ;;  %v621_v46 = vadd.f32 %v620_v42, %v619_v34  ;;  %v645_v47 = vadd.f32 %v644_v43, %v643_v36 }
 0x11a   :  { %v498_v45 = vadd.f32 %v827_v39, %v475_v41  ;;  %v622_v48 = vpop.f32.mrf.mxu0  ;;  %v646_v49 = vpop.f32.mrf.mxu1 }
 0x11b   :  { %v506_v50 = vmax.f32 %v490_v44, 0.0  ;;  %v468_v52 = vmul.f32 %v621_v46, %v822_v35  ;;  %v476_v53 = vmul.f32 %v645_v47, %v822_v35 }
 0x11c   :  { %v514_v51 = vmax.f32 %v498_v45, 0.0  ;;  %v623_v54 = vpop.f32.mrf.mxu0  ;;  %v647_v55 = vpop.f32.mrf.mxu1 }
 0x11d   :  { %522 = vst [vmem:[#allocation8 + $0x28] sm:$0xff] %v506_v50  ;;  %v491_v56 = vadd.f32 %v827_v39, %v468_v52  ;;  %v499_v57 = vadd.f32 %v827_v39, %v476_v53  ;;  %v624_v58 = vadd.f32 %v623_v54, %v622_v48  ;;  %v648_v59 = vadd.f32 %v647_v55, %v646_v49 }
 0x11e   :  { %530 = vst [vmem:[#allocation8 + $0x68] sm:$0xff] %v514_v51 }
 0x11f   :  { %v507_v60 = vmax.f32 %v491_v56, 0.0  ;;  %v515_v61 = vmax.f32 %v499_v57, 0.0  ;;  %v469_v62 = vmul.f32 %v624_v58, %v822_v35  ;;  %v477_v63 = vmul.f32 %v648_v59, %v822_v35 }
 0x121   :  { %523 = vst [vmem:[#allocation8 + $0x30] sm:$0xff] %v507_v60  ;;  %531 = vst [vmem:[#allocation8 + $0x70] sm:$0xff] %v515_v61  ;;  %v492_v0 = vadd.f32 %v827_v39, %v469_v62  ;;  %v500_v1 = vadd.f32 %v827_v39, %v477_v63 }
 0x123   :  { %v508_v2 = vmax.f32 %v492_v0, 0.0  ;;  %v516_v3 = vmax.f32 %v500_v1, 0.0 }
 0x125   :  { %524 = vst [vmem:[#allocation8 + $0x38] sm:$0xff] %v508_v2  ;;  %532 = vst [vmem:[#allocation8 + $0x78] sm:$0xff] %v516_v3 }
 0x126   :  { %763 = shalt.err (!%p760_p0)
}
 0x127   :  { %544 = dma.vmem_to_hbm [thread:$0]  %s539_s3, 2048, %s871_s4, [#allocation5], %s779_s18, %s779_s18, %s780_s19  }
 0x128   :  { %776 = dma.done.wait [#allocation5], 2048  }
 0x129   :  { %777 = vsyncadd [#allocation5], 4294965248 }
 0x12a   :  { %548 = vsyncpa [#allocation4], 1 }
 0x12b   :  { %549 = vsyncpa [#allocation7], 1 }
 0x12c   :  { %550 = vsyncpa [#allocation5], 1 }

</bundles_post_ra>
